<compile_context>
chip_gen: v6e
topology: v6e:2x2x1
jax: 0.10.0
libtpu: 0.0.40
codegen_flags: <defaults>
</compile_context>

<pallas_src>
import math
import jax
import jax.numpy as jnp
from jax.experimental import pallas as pl
from jax.experimental.pallas import tpu as pltpu

# Model config (small, consistent with the module)
BATCH = 2
SEQ = 8
HIDDEN = 32
NUM_HEADS = 4
HEAD_DIM = HIDDEN // NUM_HEADS
LN_EPS = 1e-12


def electra_attention_kernel(x_ref, mask_ref, wqkv_ref, bqkv_ref, wo_ref,
                             small_ref, out_ref):
    """Single invocation over the whole batch.

    x_ref     : [B, S, H]
    mask_ref  : [B*NH, S, S]    additive attention mask, pre-broadcast per (b, h)
    wqkv_ref  : [B*NH, H, 3D]   per-(batch, head) [Wq_h | Wk_h | Wv_h] slabs
    bqkv_ref  : [B*NH, 1, 3D]   per-(batch, head) [bq_h | bk_h | bv_h]
    wo_ref    : [B*NH, D, H]    per-(batch, head) rows of Wo
    small_ref : [3, H]          rows: bo, gamma, beta
    out_ref   : [B, S, H]
    """
    B, S, H = x_ref.shape
    BH, _, D3 = wqkv_ref.shape
    NH = BH // B
    D = D3 // 3

    x3 = x_ref[...].astype(jnp.float32)                              # [B, S, H]

    # Replicate activations across heads so every (batch, head) pair becomes
    # one batch index of a single 3-D batched matmul (no in-kernel transposes;
    # only leading-dim broadcast + merge, both tile-aligned).
    xb = jnp.broadcast_to(x3.reshape(B, 1, S, H), (B, NH, S, H)).reshape(BH, S, H)

    # Head-major fused QKV projection: one batched MXU op.
    qkv = jnp.einsum("bse,bef->bsf", xb, wqkv_ref[...],
                     preferred_element_type=jnp.float32) + bqkv_ref[...]  # [BH, S, 3D]

    inv_sqrt_d = 1.0 / math.sqrt(D)
    q = qkv[..., :D] * inv_sqrt_d          # 1/sqrt(d) applied once, on Q
    k = qkv[..., D:2 * D]
    v = qkv[..., 2 * D:]

    # Scores + additive mask + softmax: single wide ops over all (b, h) pairs.
    scores = jnp.einsum("bqd,bkd->bqk", q, k,
                        preferred_element_type=jnp.float32) + mask_ref[...]
    # Logits are bounded and the -1e4 mask underflows exp() to 0, so the
    # max-subtraction is unnecessary here (saves an XLU reduce).
    e = jnp.exp(scores)
    denom = jnp.sum(e, axis=-1, keepdims=True)
    probs = e * pl.reciprocal(denom, approx=False)   # exact: keeps 1e-4 tolerance
    # dropout(attention_probs): eval mode -> identity

    ctx = jnp.einsum("bqk,bkd->bqd", probs, v,
                     preferred_element_type=jnp.float32)              # [BH, S, D]

    # Output projection per head (one batched matmul), then reduce over heads.
    # This folds the head-merge concatenate into the projection with no
    # transpose and no dependent accumulate chain.
    o_bh = jnp.einsum("bsd,bde->bse", ctx, wo_ref[...],
                      preferred_element_type=jnp.float32)             # [BH, S, H]
    o = jnp.sum(o_bh.reshape(B, NH, S, H), axis=1)                    # [B, S, H]

    bo = small_ref[0:1, :]       # [1, H] -> broadcasts over (B, S)
    gamma = small_ref[1:2, :]
    beta = small_ref[2:3, :]

    # ElectraSelfOutput: dense bias -> (dropout = id) -> residual -> LayerNorm,
    # done once over the whole batch; single full-block store.
    h_res = o + bo + x3
    mean = jnp.mean(h_res, axis=-1, keepdims=True)
    var = jnp.mean((h_res - mean) ** 2, axis=-1, keepdims=True)
    normed = (h_res - mean) * jax.lax.rsqrt(var + LN_EPS)
    out_ref[...] = (normed * gamma + beta).astype(out_ref.dtype)


def electra_attention(x, attention_mask, params):
    """x: [B, S, H] float32; attention_mask: HF additive mask [B, 1, 1, S]."""
    B, S, H = x.shape
    NH, D = NUM_HEADS, HEAD_DIM
    BH = B * NH

    # ---- host-side layout plumbing (tiny arrays, pure packing) ----
    def head_major(w):          # [H_in, H_out] -> [NH, H_in, D]
        return w.reshape(H, NH, D).transpose(1, 0, 2)

    wqkv_heads = jnp.concatenate(
        [head_major(params["wq"]), head_major(params["wk"]),
         head_major(params["wv"])], axis=-1)                           # [NH, H, 3D]
    bqkv_heads = jnp.concatenate(
        [params["bq"].reshape(NH, 1, D), params["bk"].reshape(NH, 1, D),
         params["bv"].reshape(NH, 1, D)], axis=-1)                     # [NH, 1, 3D]
    wo_heads = params["wo"].reshape(NH, D, H)                          # [NH, D, H]

    # Replicate per batch so the kernel sees one fused (b, h) leading axis
    # (index = b*NH + h) everywhere — no in-kernel transposes required.
    wqkv_bh = jnp.broadcast_to(wqkv_heads[None], (B, NH, H, 3 * D)).reshape(BH, H, 3 * D)
    bqkv_bh = jnp.broadcast_to(bqkv_heads[None], (B, NH, 1, 3 * D)).reshape(BH, 1, 3 * D)
    wo_bh = jnp.broadcast_to(wo_heads[None], (B, NH, D, H)).reshape(BH, D, H)
    mask_bh = jnp.broadcast_to(attention_mask.reshape(B, 1, 1, S),
                               (B, NH, S, S)).reshape(BH, S, S).astype(jnp.float32)
    small = jnp.concatenate(
        [params["bo"], params["gamma"], params["beta"]], axis=0)       # [3, H]

    fn = pl.pallas_call(
        electra_attention_kernel,
        out_shape=jax.ShapeDtypeStruct((B, S, H), jnp.float32),
        grid_spec=pltpu.PrefetchScalarGridSpec(
            num_scalar_prefetch=0,
            grid=(1,),                                    # single kernel step
            in_specs=[
                pl.BlockSpec((B, S, H), lambda i: (0, 0, 0)),       # x
                pl.BlockSpec((BH, S, S), lambda i: (0, 0, 0)),      # additive mask
                pl.BlockSpec((BH, H, 3 * D), lambda i: (0, 0, 0)),  # fused QKV weights
                pl.BlockSpec((BH, 1, 3 * D), lambda i: (0, 0, 0)),  # fused QKV bias
                pl.BlockSpec((BH, D, H), lambda i: (0, 0, 0)),      # output weight rows
                pl.BlockSpec((3, H), lambda i: (0, 0)),             # bo/gamma/beta
            ],
            out_specs=pl.BlockSpec((B, S, H), lambda i: (0, 0, 0)),
        ),
        compiler_params=pltpu.CompilerParams(
            dimension_semantics=("arbitrary",)),
    )
    return fn(x, mask_bh, wqkv_bh, bqkv_bh, wo_bh, small)


def electra_attention_ref(x, attention_mask, params):
    """Pure-JAX reference mirroring the PyTorch forward (eval mode)."""
    B, S, H = x.shape
    q = x @ params["wq"] + params["bq"][0]
    k = x @ params["wk"] + params["bk"][0]
    v = x @ params["wv"] + params["bv"][0]

    def split(t):  # [B,S,H] -> [B,nh,S,d]
        return t.reshape(B, S, NUM_HEADS, HEAD_DIM).transpose(0, 2, 1, 3)

    qh, kh, vh = split(q), split(k), split(v)
    scores = jnp.einsum("bhqd,bhkd->bhqk", qh, kh) / math.sqrt(HEAD_DIM)
    scores = scores + attention_mask            # [B,1,1,S] broadcast
    probs = jax.nn.softmax(scores, axis=-1)
    ctx = jnp.einsum("bhqk,bhkd->bhqd", probs, vh)
    ctx = ctx.transpose(0, 2, 1, 3).reshape(B, S, H)
    o = ctx @ params["wo"] + params["bo"][0]
    h_res = o + x
    mean = jnp.mean(h_res, axis=-1, keepdims=True)
    var = jnp.mean((h_res - mean) ** 2, axis=-1, keepdims=True)
    return (h_res - mean) / jnp.sqrt(var + LN_EPS) * params["gamma"][0] + params["beta"][0]


def init_params(key):
    ks = jax.random.split(key, 8)

    def lin(k_w):
        # torch nn.Linear weight is [out,in]; we store the transpose [in,out]
        return jax.random.normal(k_w, (HIDDEN, HIDDEN), jnp.float32) * 0.02

    return {
        "wq": lin(ks[0]), "bq": jax.random.normal(ks[1], (1, HIDDEN), jnp.float32) * 0.02,
        "wk": lin(ks[2]), "bk": jax.random.normal(ks[3], (1, HIDDEN), jnp.float32) * 0.02,
        "wv": lin(ks[4]), "bv": jax.random.normal(ks[5], (1, HIDDEN), jnp.float32) * 0.02,
        "wo": lin(ks[6]), "bo": jax.random.normal(ks[7], (1, HIDDEN), jnp.float32) * 0.02,
        "gamma": jnp.ones((1, HIDDEN), jnp.float32),
        "beta": jnp.zeros((1, HIDDEN), jnp.float32),
    }


if __name__ == "__main__":
    key = jax.random.PRNGKey(0)
    k_x, k_p = jax.random.split(key)
    x = jax.random.normal(k_x, (BATCH, SEQ, HIDDEN), jnp.float32)
    params = init_params(k_p)

    # HF-style additive mask [B,1,1,S]: mask out the last 2 tokens of batch 1
    mask = jnp.zeros((BATCH, 1, 1, SEQ), jnp.float32)
    mask = mask.at[1, 0, 0, -2:].set(-10000.0)

    # TODO(synk): cross-attention / past_key_value / global_tokens_embed /
    # relative position embedding branches not implemented (inactive in this config).

    out = electra_attention(x, mask, params)
    out = jax.block_until_ready(out)

    ref = electra_attention_ref(x, mask, params)
    assert jnp.allclose(out, ref, atol=1e-4, rtol=1e-4), "mismatch vs reference"
    print("KERNEL_OK")
</pallas_src>

<mosaic_0001>
module attributes {stable_mosaic.version = 11 : i64} {
  func.func @electra_attention_kernel(%arg0: i32, %arg1: memref<2x8x32xf32, #tpu.memory_space<vmem>>, %arg2: memref<8x8x8xf32, #tpu.memory_space<vmem>>, %arg3: memref<8x32x24xf32, #tpu.memory_space<vmem>>, %arg4: memref<8x1x24xf32, #tpu.memory_space<vmem>>, %arg5: memref<8x8x32xf32, #tpu.memory_space<vmem>>, %arg6: memref<3x32xf32, #tpu.memory_space<vmem>>, %arg7: memref<2x8x32xf32, #tpu.memory_space<vmem>>) attributes {dimension_semantics = [#tpu.dimension_semantics<arbitrary>], iteration_bounds = array<i64: 1>, scalar_prefetch = 0 : i64, scratch_operands = 0 : i64, tpu.core_type = #tpu.core_type<tc>, window_params = [{pipeline_mode = #tpu.pipeline_mode<synchronous>, transform_indices = @transform_0, window_bounds = array<i64: 2, 8, 32>}, {pipeline_mode = #tpu.pipeline_mode<synchronous>, transform_indices = @transform_1, window_bounds = array<i64: 8, 8, 8>}, {pipeline_mode = #tpu.pipeline_mode<synchronous>, transform_indices = @transform_2, window_bounds = array<i64: 8, 32, 24>}, {pipeline_mode = #tpu.pipeline_mode<synchronous>, transform_indices = @transform_3, window_bounds = array<i64: 8, 1, 24>}, {pipeline_mode = #tpu.pipeline_mode<synchronous>, transform_indices = @transform_4, window_bounds = array<i64: 8, 8, 32>}, {pipeline_mode = #tpu.pipeline_mode<synchronous>, transform_indices = @transform_5, window_bounds = array<i64: 3, 32>}, {pipeline_mode = #tpu.pipeline_mode<synchronous>, transform_indices = @transform_6, window_bounds = array<i64: 2, 8, 32>}]} {
    %c0 = arith.constant 0 : index
    %c0_0 = arith.constant 0 : index
    %c0_1 = arith.constant 0 : index
    %0 = vector.load %arg1[%c0, %c0_0, %c0_1] : memref<2x8x32xf32, #tpu.memory_space<vmem>>, vector<2x8x32xf32>
    %1 = vector.shape_cast %0 : vector<2x8x32xf32> to vector<2x1x8x32xf32>
    %2 = vector.shape_cast %1 : vector<2x1x8x32xf32> to vector<2x1x8x32xf32>
    %3 = vector.broadcast %2 : vector<2x1x8x32xf32> to vector<2x4x8x32xf32>
    %4 = vector.shape_cast %3 : vector<2x4x8x32xf32> to vector<8x8x32xf32>
    %c0_2 = arith.constant 0 : index
    %c0_3 = arith.constant 0 : index
    %c0_4 = arith.constant 0 : index
    %5 = vector.load %arg3[%c0_2, %c0_3, %c0_4] : memref<8x32x24xf32, #tpu.memory_space<vmem>>, vector<8x32x24xf32>
    "tpu.trace_start"() <{level = 10 : i32, message = "bse,bef->bsf"}> : () -> ()
    %cst = arith.constant dense<0.000000e+00> : vector<8x8x24xf32>
    %6 = tpu.matmul %4, %5, %cst {dimension_numbers = #tpu.dot_dimension_numbers<[2], [1], [1], [2], [0, 0, 0, 1, 1, 2], [0], [0]>} : vector<8x8x32xf32>, vector<8x32x24xf32>, vector<8x8x24xf32> -> vector<8x8x24xf32>
    "tpu.trace_stop"() : () -> ()
    %c0_5 = arith.constant 0 : index
    %c0_6 = arith.constant 0 : index
    %c0_7 = arith.constant 0 : index
    %7 = vector.load %arg4[%c0_5, %c0_6, %c0_7] : memref<8x1x24xf32, #tpu.memory_space<vmem>>, vector<8x1x24xf32>
    %8 = vector.broadcast %7 : vector<8x1x24xf32> to vector<8x8x24xf32>
    %9 = arith.addf %6, %8 : vector<8x8x24xf32>
    %10 = vector.extract_strided_slice %9 {offsets = [0, 0, 0], sizes = [8, 8, 8], strides = [1, 1, 1]} : vector<8x8x24xf32> to vector<8x8x8xf32>
    %cst_8 = arith.constant 0.353553385 : f32
    %11 = vector.broadcast %cst_8 : f32 to vector<8x8x8xf32>
    %12 = arith.mulf %10, %11 : vector<8x8x8xf32>
    %13 = vector.extract_strided_slice %9 {offsets = [0, 0, 8], sizes = [8, 8, 8], strides = [1, 1, 1]} : vector<8x8x24xf32> to vector<8x8x8xf32>
    %14 = vector.extract_strided_slice %9 {offsets = [0, 0, 16], sizes = [8, 8, 8], strides = [1, 1, 1]} : vector<8x8x24xf32> to vector<8x8x8xf32>
    "tpu.trace_start"() <{level = 10 : i32, message = "bqd,bkd->bqk"}> : () -> ()
    %cst_9 = arith.constant dense<0.000000e+00> : vector<8x8x8xf32>
    %15 = tpu.matmul %12, %13, %cst_9 {dimension_numbers = #tpu.dot_dimension_numbers<[2], [2], [1], [1], [0, 0, 0, 1, 1, 1], [0], [0]>} : vector<8x8x8xf32>, vector<8x8x8xf32>, vector<8x8x8xf32> -> vector<8x8x8xf32>
    "tpu.trace_stop"() : () -> ()
    %c0_10 = arith.constant 0 : index
    %c0_11 = arith.constant 0 : index
    %c0_12 = arith.constant 0 : index
    %16 = vector.load %arg2[%c0_10, %c0_11, %c0_12] : memref<8x8x8xf32, #tpu.memory_space<vmem>>, vector<8x8x8xf32>
    %17 = arith.addf %15, %16 : vector<8x8x8xf32>
    %18 = math.exp %17 : vector<8x8x8xf32>
    %cst_13 = arith.constant dense<0.000000e+00> : vector<8x8xf32>
    %19 = vector.multi_reduction <add>, %18, %cst_13 [2] : vector<8x8x8xf32> to vector<8x8xf32>
    %20 = vector.shape_cast %19 : vector<8x8xf32> to vector<8x8x1xf32>
    %21 = tpu.reciprocal %20 : vector<8x8x1xf32> -> vector<8x8x1xf32>
    %22 = vector.broadcast %21 : vector<8x8x1xf32> to vector<8x8x8xf32>
    %23 = arith.mulf %18, %22 : vector<8x8x8xf32>
    "tpu.trace_start"() <{level = 10 : i32, message = "bqk,bkd->bqd"}> : () -> ()
    %cst_14 = arith.constant dense<0.000000e+00> : vector<8x8x8xf32>
    %24 = tpu.matmul %23, %14, %cst_14 {dimension_numbers = #tpu.dot_dimension_numbers<[2], [1], [1], [2], [0, 0, 0, 1, 1, 2], [0], [0]>} : vector<8x8x8xf32>, vector<8x8x8xf32>, vector<8x8x8xf32> -> vector<8x8x8xf32>
    "tpu.trace_stop"() : () -> ()
    %c0_15 = arith.constant 0 : index
    %c0_16 = arith.constant 0 : index
    %c0_17 = arith.constant 0 : index
    %25 = vector.load %arg5[%c0_15, %c0_16, %c0_17] : memref<8x8x32xf32, #tpu.memory_space<vmem>>, vector<8x8x32xf32>
    "tpu.trace_start"() <{level = 10 : i32, message = "bsd,bde->bse"}> : () -> ()
    %cst_18 = arith.constant dense<0.000000e+00> : vector<8x8x32xf32>
    %26 = tpu.matmul %24, %25, %cst_18 {dimension_numbers = #tpu.dot_dimension_numbers<[2], [1], [1], [2], [0, 0, 0, 1, 1, 2], [0], [0]>} : vector<8x8x8xf32>, vector<8x8x32xf32>, vector<8x8x32xf32> -> vector<8x8x32xf32>
    "tpu.trace_stop"() : () -> ()
    %27 = vector.shape_cast %26 : vector<8x8x32xf32> to vector<2x4x8x32xf32>
    %cst_19 = arith.constant dense<0.000000e+00> : vector<2x8x32xf32>
    %28 = vector.multi_reduction <add>, %27, %cst_19 [1] : vector<2x4x8x32xf32> to vector<2x8x32xf32>
    %c0_20 = arith.constant 0 : index
    %c0_21 = arith.constant 0 : index
    %29 = vector.load %arg6[%c0_20, %c0_21] : memref<3x32xf32, #tpu.memory_space<vmem>>, vector<1x32xf32>
    %c1 = arith.constant 1 : index
    %c0_22 = arith.constant 0 : index
    %30 = vector.load %arg6[%c1, %c0_22] : memref<3x32xf32, #tpu.memory_space<vmem>>, vector<1x32xf32>
    %c2 = arith.constant 2 : index
    %c0_23 = arith.constant 0 : index
    %31 = vector.load %arg6[%c2, %c0_23] : memref<3x32xf32, #tpu.memory_space<vmem>>, vector<1x32xf32>
    %32 = vector.shape_cast %29 : vector<1x32xf32> to vector<1x1x32xf32>
    %33 = vector.broadcast %32 : vector<1x1x32xf32> to vector<2x8x32xf32>
    %34 = arith.addf %28, %33 : vector<2x8x32xf32>
    %35 = arith.addf %34, %0 : vector<2x8x32xf32>
    %cst_24 = arith.constant dense<0.000000e+00> : vector<2x8xf32>
    %36 = vector.multi_reduction <add>, %35, %cst_24 [2] : vector<2x8x32xf32> to vector<2x8xf32>
    %37 = vector.shape_cast %36 : vector<2x8xf32> to vector<2x8x1xf32>
    %cst_25 = arith.constant 3.200000e+01 : f32
    %38 = vector.broadcast %cst_25 : f32 to vector<2x8x1xf32>
    %39 = arith.divf %37, %38 : vector<2x8x1xf32>
    %40 = vector.broadcast %39 : vector<2x8x1xf32> to vector<2x8x32xf32>
    %41 = arith.subf %35, %40 : vector<2x8x32xf32>
    %42 = arith.mulf %41, %41 : vector<2x8x32xf32>
    %cst_26 = arith.constant dense<0.000000e+00> : vector<2x8xf32>
    %43 = vector.multi_reduction <add>, %42, %cst_26 [2] : vector<2x8x32xf32> to vector<2x8xf32>
    %44 = vector.shape_cast %43 : vector<2x8xf32> to vector<2x8x1xf32>
    %cst_27 = arith.constant 3.200000e+01 : f32
    %45 = vector.broadcast %cst_27 : f32 to vector<2x8x1xf32>
    %46 = arith.divf %44, %45 : vector<2x8x1xf32>
    %47 = vector.broadcast %39 : vector<2x8x1xf32> to vector<2x8x32xf32>
    %48 = arith.subf %35, %47 : vector<2x8x32xf32>
    %cst_28 = arith.constant 9.99999996E-13 : f32
    %49 = vector.broadcast %cst_28 : f32 to vector<2x8x1xf32>
    %50 = arith.addf %46, %49 : vector<2x8x1xf32>
    %51 = math.rsqrt %50 : vector<2x8x1xf32>
    %52 = vector.broadcast %51 : vector<2x8x1xf32> to vector<2x8x32xf32>
    %53 = arith.mulf %48, %52 : vector<2x8x32xf32>
    %54 = vector.shape_cast %30 : vector<1x32xf32> to vector<1x1x32xf32>
    %55 = vector.broadcast %54 : vector<1x1x32xf32> to vector<2x8x32xf32>
    %56 = arith.mulf %53, %55 : vector<2x8x32xf32>
    %57 = vector.shape_cast %31 : vector<1x32xf32> to vector<1x1x32xf32>
    %58 = vector.broadcast %57 : vector<1x1x32xf32> to vector<2x8x32xf32>
    %59 = arith.addf %56, %58 : vector<2x8x32xf32>
    %c0_29 = arith.constant 0 : index
    %c0_30 = arith.constant 0 : index
    %c0_31 = arith.constant 0 : index
    %60 = vector.load %arg7[%c0_29, %c0_30, %c0_31] : memref<2x8x32xf32, #tpu.memory_space<vmem>>, vector<2x8x32xf32>
    tpu.vector_store %arg7[%c0_29, %c0_30, %c0_31], %59 {strides = array<i32>} : memref<2x8x32xf32, #tpu.memory_space<vmem>>, vector<2x8x32xf32>,
    return
  }
  func.func @transform_0(%arg0: i32) -> (i32, i32, i32) {
    %c0_i32 = arith.constant 0 : i32
    %c0_i32_0 = arith.constant 0 : i32
    %c0_i32_1 = arith.constant 0 : i32
    %c0_i32_2 = arith.constant 0 : i32
    return %c0_i32, %c0_i32_0, %c0_i32_1 : i32, i32, i32
  }
  func.func @transform_1(%arg0: i32) -> (i32, i32, i32) {
    %c0_i32 = arith.constant 0 : i32
    %c0_i32_0 = arith.constant 0 : i32
    %c0_i32_1 = arith.constant 0 : i32
    %c0_i32_2 = arith.constant 0 : i32
    return %c0_i32, %c0_i32_0, %c0_i32_1 : i32, i32, i32
  }
  func.func @transform_2(%arg0: i32) -> (i32, i32, i32) {
    %c0_i32 = arith.constant 0 : i32
    %c0_i32_0 = arith.constant 0 : i32
    %c0_i32_1 = arith.constant 0 : i32
    %c0_i32_2 = arith.constant 0 : i32
    return %c0_i32, %c0_i32_0, %c0_i32_1 : i32, i32, i32
  }
  func.func @transform_3(%arg0: i32) -> (i32, i32, i32) {
    %c0_i32 = arith.constant 0 : i32
    %c0_i32_0 = arith.constant 0 : i32
    %c0_i32_1 = arith.constant 0 : i32
    %c0_i32_2 = arith.constant 0 : i32
    return %c0_i32, %c0_i32_0, %c0_i32_1 : i32, i32, i32
  }
  func.func @transform_4(%arg0: i32) -> (i32, i32, i32) {
    %c0_i32 = arith.constant 0 : i32
    %c0_i32_0 = arith.constant 0 : i32
    %c0_i32_1 = arith.constant 0 : i32
    %c0_i32_2 = arith.constant 0 : i32
    return %c0_i32, %c0_i32_0, %c0_i32_1 : i32, i32, i32
  }
  func.func @transform_5(%arg0: i32) -> (i32, i32) {
    %c0_i32 = arith.constant 0 : i32
    %c0_i32_0 = arith.constant 0 : i32
    %c0_i32_1 = arith.constant 0 : i32
    return %c0_i32, %c0_i32_0 : i32, i32
  }
  func.func @transform_6(%arg0: i32) -> (i32, i32, i32) {
    %c0_i32 = arith.constant 0 : i32
    %c0_i32_0 = arith.constant 0 : i32
    %c0_i32_1 = arith.constant 0 : i32
    %c0_i32_2 = arith.constant 0 : i32
    return %c0_i32, %c0_i32_0, %c0_i32_1 : i32, i32, i32
  }
}

</mosaic_0001>

<bundles_post_ra>
// kernel: tpu_custom_call.1
= control target key start
LH: loop header
LB: loop body
LE: loop exit
PB: predicated region body
PF: predicated region fallthrough
CT: control target
= control target key end

     0   :  { %v3072_v2 = vmov 0.0   ;;  %vm114_vm0 = vcmask 261120   ;;  %vm3073_vm1 = vmmov 0   ;;  %s3534_s0 = inlined_call_operand.vmem [shape: f32[2,8,32], index: 0, kind: input, shape index: {}]   ;;  %s3535_s1 = inlined_call_operand.vmem [shape: f32[8,8,8], index: 1, kind: input, shape index: {}]   ;;  %s3536_s2 = inlined_call_operand.vmem [shape: f32[8,32,24], index: 2, kind: input, shape index: {}]   ;;  %s3537_s3 = inlined_call_operand.vmem [shape: f32[8,1,24], index: 3, kind: input, shape index: {}]   ;;  %s3538_s4 = inlined_call_operand.vmem [shape: f32[8,8,32], index: 4, kind: input, shape index: {}]   ;;  %s3539_s5 = inlined_call_operand.vmem [shape: f32[3,32], index: 5, kind: input, shape index: {}]   ;;  %s3540_s6 = inlined_call_operand.hbm [shape: f32[2,8,32], index: 6, kind: output, shape index: {}]  }
   0x1   :  { %v29_v0 = vld [vmem:[%s3536_s2 + $0x18] sm:$0xff]  ;;  %2799 = vmatprep.subr.mxu0 %v3072_v2  ;;  %2810 = vmatprep.subr.mxu1 %v3072_v2  ;;  %v28_v3 = vld [vmem:[%s3536_s2 + $0x10] sm:$0xff]  ;;  %v27_v5 = vld [vmem:[%s3536_s2 + $0x8] sm:$0xff] }
   0x2   :  { %v33_v1 = vld [vmem:[%s3536_s2 + $0x38] sm:$0xff]  ;;  %v32_v4 = vld [vmem:[%s3536_s2 + $0x30] sm:$0xff]  ;;  %2800 = vmatpush3.msra.mxu0 %v29_v0  ;;  %v31_v6 = vld [vmem:[%s3536_s2 + $0x28] sm:$0xff]  ;;  %2807 = vmatprep.mubr.msk.f32.mxu0 %vm3073_vm1, %v3072_v2 }
   0x3   :  { %2811 = vmatpush3.msra.mxu1 %v33_v1  ;;  %2801 = vmatprep.subr.mxu0 %v3072_v2  ;;  %v26_v7 = vld [vmem:[%s3536_s2] sm:$0xff]  ;;  %v37_v10 = vld [vmem:[%s3536_s2 + $0x58] sm:$0xff]  ;;  %v36_v12 = vld [vmem:[%s3536_s2 + $0x50] sm:$0xff] }
   0x4   :  { %2812 = vmatprep.subr.mxu1 %v3072_v2  ;;  %2802 = vmatpush3.msra.mxu0 %v28_v3  ;;  %v30_v8 = vld [vmem:[%s3536_s2 + $0x20] sm:$0xff]  ;;  %v41_v11 = vld [vmem:[%s3536_s2 + $0x78] sm:$0xff]  ;;  %v40_v13 = vld [vmem:[%s3536_s2 + $0x70] sm:$0xff] }
   0x5   :  { %2813 = vmatpush3.msra.mxu1 %v32_v4  ;;  %2803 = vmatprep.subr.mxu0 %v3072_v2  ;;  %v3147_v9 = vld [vmem:[%s3534_s0] sm:$0xff] }
   0x6   :  { %2814 = vmatprep.subr.mxu1 %v3072_v2  ;;  %2804 = vmatpush3.msra.mxu0 %v27_v5 }
   0x7   :  { %2815 = vmatpush3.msra.mxu1 %v31_v6  ;;  %2805 = vmatprep.subr.mxu0 %v3072_v2 }
   0x8   :  { %2816 = vmatprep.subr.mxu1 %v3072_v2  ;;  %2806 = vmatpush3.msra.mxu0 %v26_v7 }
   0x9   :  { %2817 = vmatpush3.msra.mxu1 %v30_v8  ;;  %2808 = vmatmul.mubr.msk.f32.vlgmr.msra.gmra.mxu0 %vm114_vm0, %v3147_v9 }
   0xa   :  { %2818 = vmatprep.mubr.msk.f32.mxu1 %vm3073_vm1, %v3072_v2  ;;  %2821 = vmatprep.subr.mxu0 %v3072_v2 }
   0xb   :  { %2832 = vmatprep.subr.mxu1 %v3072_v2  ;;  %2819 = vmatmul.mubr.msk.f32.vlgmr.msra.gmra.mxu1 %vm114_vm0, %v3147_v9 }
   0xc   :  { %11 = vsyncpa [#allocation3], 0  ;;  %2822 = vmatpush3.msra.mxu0 %v37_v10  ;;  %2833 = vmatpush3.msra.mxu1 %v41_v11  ;;  %v35_v14 = vld [vmem:[%s3536_s2 + $0x48] sm:$0xff]  ;;  %v34_v16 = vld [vmem:[%s3536_s2 + $0x40] sm:$0xff]  ;;  %s3074_s19 = smov 120   ;;  %s3075_s7 = smov 112  }
   0xd   :  { %2823 = vmatprep.subr.mxu0 %v3072_v2  ;;  %2834 = vmatprep.subr.mxu1 %v3072_v2  ;;  %v39_v15 = vld [vmem:[%s3536_s2 + $0x68] sm:$0xff]  ;;  %v38_v17 = vld [vmem:[%s3536_s2 + $0x60] sm:$0xff]  ;;  %v45_v18 = vld [vmem:[%s3536_s2 + $0x98] sm:$0xff]  ;;  %vm700_vm2 = vcmask 64512  }
   0xe   :  { %2824 = vmatpush3.msra.mxu0 %v36_v12  ;;  %2835 = vmatpush3.msra.mxu1 %v40_v13  ;;  %v49_v19 = vld [vmem:[%s3536_s2 + $0xb8] sm:$0xff]  ;;  %v44_v20 = vld [vmem:[%s3536_s2 + $0x90] sm:$0xff]  ;;  %v43_v22 = vld [vmem:[%s3536_s2 + $0x88] sm:$0xff] }
   0xf   :  { %2825 = vmatprep.subr.mxu0 %v3072_v2  ;;  %2836 = vmatprep.subr.mxu1 %v3072_v2  ;;  %v48_v21 = vld [vmem:[%s3536_s2 + $0xb0] sm:$0xff]  ;;  %v47_v23 = vld [vmem:[%s3536_s2 + $0xa8] sm:$0xff]  ;;  %v42_v24 = vld [vmem:[%s3536_s2 + $0x80] sm:$0xff] }
  0x10   :  { %2826 = vmatpush3.msra.mxu0 %v35_v14  ;;  %2837 = vmatpush3.msra.mxu1 %v39_v15  ;;  %v46_v25 = vld [vmem:[%s3536_s2 + $0xa0] sm:$0xff]  ;;  %v3234_v26 = vld [vmem:[%s3534_s0 + $0x8] sm:$0xff]  ;;  %v53_v27 = vld [vmem:[%s3536_s2 + $0xd8] sm:$0xff] }
  0x11   :  { %2827 = vmatprep.subr.mxu0 %v3072_v2  ;;  %2838 = vmatprep.subr.mxu1 %v3072_v2  ;;  %v57_v28 = vld [vmem:[%s3536_s2 + $0xf8] sm:$0xff]  ;;  %v52_v29 = vld [vmem:[%s3536_s2 + $0xd0] sm:$0xff]  ;;  %v51_v31 = vld [vmem:[%s3536_s2 + $0xc8] sm:$0xff] }
  0x12   :  { %2828 = vmatpush3.msra.mxu0 %v34_v16  ;;  %2829 = vmatprep.mubr.msk.f32.mxu0 %vm3073_vm1, %v3072_v2  ;;  %v56_v30 = vld [vmem:[%s3536_s2 + $0xf0] sm:$0xff]  ;;  %v55_v32 = vld [vmem:[%s3536_s2 + $0xe8] sm:$0xff]  ;;  %v50_v33 = vld [vmem:[%s3536_s2 + $0xc0] sm:$0xff] }
  0x13   :  { %2839 = vmatpush3.msra.mxu1 %v38_v17  ;;  %2830 = vmatmul.mubr.msk.f32.vlgmr.msra.gmra.mxu0 %vm114_vm0, %v3147_v9  ;;  %v54_v34 = vld [vmem:[%s3536_s2 + $0xe0] sm:$0xff]  ;;  %s3076_s2 = smov [#allocation2]  }
  0x14   :  { %2840 = vmatprep.mubr.msk.f32.mxu1 %vm3073_vm1, %v3072_v2  ;;  %2843 = vmatprep.subr.mxu0 %v3072_v2  ;;  %v2660_v35 = vld [vmem:[%s3537_s3] ss:$0 sm:$0xff]  ;;  %v2661_v37 = vld [vmem:[%s3537_s3 + $0x1] ss:$0 sm:$0xff]  ;;  %v2662_v43 = vld [vmem:[%s3537_s3 + $0x2] ss:$0 sm:$0xff] }
  0x15   :  { %2854 = vmatprep.subr.mxu1 %v3072_v2  ;;  %2841 = vmatmul.mubr.msk.f32.vlgmr.msra.gmra.mxu1 %vm114_vm0, %v3147_v9  ;;  %v2663_v45 = vld [vmem:[%s3537_s3 + $0x3] ss:$0 sm:$0xff]  ;;  %v2664_v51 = vld [vmem:[%s3537_s3 + $0x4] ss:$0 sm:$0xff]  ;;  %v2665_v52 = vld [vmem:[%s3537_s3 + $0x5] ss:$0 sm:$0xff] }
  0x16   :  { %2844 = vmatpush3.msra.mxu0 %v45_v18  ;;  %2855 = vmatpush3.msra.mxu1 %v49_v19  ;;  %v2666_v59 = vld [vmem:[%s3537_s3 + $0x6] ss:$0 sm:$0xff]  ;;  %v2667_v60 = vld [vmem:[%s3537_s3 + $0x7] ss:$0 sm:$0xff]  ;;  %s2649_s16 = sshll.u32 %s3076_s2, 4  ;;  %s2650_s16 = int_to_ptr.vmem [resolvable:$true] %s2649_s16 }
  0x17   :  { %2845 = vmatprep.subr.mxu0 %v3072_v2  ;;  %2856 = vmatprep.subr.mxu1 %v3072_v2  ;;  %s3050_s17 = scalar_lea.vmem %s2650_s16, 256  ;;  %p3055_p1 = scmp.lt.s32.totalorder %s2650_s16, %s2650_s16 }
  0x18   :  { %2846 = vmatpush3.msra.mxu0 %v44_v20  ;;  %2857 = vmatpush3.msra.mxu1 %v48_v21  ;;  %p3051_p0 = scmp.ne.s32.totalorder %s2650_s16, %s3050_s17  ;;  %p3056_p2 = scmp.lt.s32.totalorder %s3050_s17, %s3050_s17 }
  0x19   :  { %2847 = vmatprep.subr.mxu0 %v3072_v2  ;;  %2858 = vmatprep.subr.mxu1 %v3072_v2 }
  0x1a   :  { %2848 = vmatpush3.msra.mxu0 %v43_v22  ;;  %2859 = vmatpush3.msra.mxu1 %v47_v23  ;;  %v689_v23 = vld [vmem:[%s3535_s1] sm:$0xff]  ;;  %p3057_p3 = por %p3056_p2, %p3055_p1 }
  0x1b   :  { %2849 = vmatprep.subr.mxu0 %v3072_v2  ;;  %2860 = vmatprep.subr.mxu1 %v3072_v2 }
  0x1c   :  { %2850 = vmatpush3.msra.mxu0 %v42_v24  ;;  %2851 = vmatprep.mubr.msk.f32.mxu0 %vm3073_vm1, %v3072_v2  ;;  %p3058_p4 = pnand %p3057_p3, %p3051_p0 }
  0x1d   :  { %2861 = vmatpush3.msra.mxu1 %v46_v25  ;;  %2862 = vmatprep.mubr.msk.f32.mxu1 %vm3073_vm1, %v3072_v2 }
  0x1e   :  { %2852 = vmatmul.mubr.msk.f32.vlgmr.msra.gmra.mxu0 %vm114_vm0, %v3234_v26  ;;  %2863 = vmatmul.mubr.msk.f32.vlgmr.msra.gmra.mxu1 %vm114_vm0, %v3234_v26 }
  0x1f   :  { %2865 = vmatprep.subr.mxu0 %v3072_v2  ;;  %2876 = vmatprep.subr.mxu1 %v3072_v2 }
  0x20   :  { %2866 = vmatpush3.msra.mxu0 %v53_v27  ;;  %2877 = vmatpush3.msra.mxu1 %v57_v28  ;;  %v690_v28 = vld [vmem:[%s3535_s1 + $0x8] sm:$0xff] }
  0x21   :  { %2867 = vmatprep.subr.mxu0 %v3072_v2  ;;  %2878 = vmatprep.subr.mxu1 %v3072_v2 }
  0x22   :  { %2868 = vmatpush3.msra.mxu0 %v52_v29  ;;  %2879 = vmatpush3.msra.mxu1 %v56_v30 }
  0x23   :  { %2869 = vmatprep.subr.mxu0 %v3072_v2  ;;  %2880 = vmatprep.subr.mxu1 %v3072_v2 }
  0x24   :  { %2870 = vmatpush3.msra.mxu0 %v51_v31  ;;  %2881 = vmatpush3.msra.mxu1 %v55_v32 }
  0x25   :  { %2871 = vmatprep.subr.mxu0 %v3072_v2  ;;  %2882 = vmatprep.subr.mxu1 %v3072_v2 }
  0x26   :  { %2872 = vmatpush3.msra.mxu0 %v50_v33  ;;  %2873 = vmatprep.mubr.msk.f32.mxu0 %vm3073_vm1, %v3072_v2 }
  0x27   :  { %2883 = vmatpush3.msra.mxu1 %v54_v34  ;;  %2884 = vmatprep.mubr.msk.f32.mxu1 %vm3073_vm1, %v3072_v2  ;;  %v691_v34 = vld [vmem:[%s3535_s1 + $0x10] sm:$0xff] }
  0x28   :  { %2874 = vmatmul.mubr.msk.f32.vlgmr.msra.gmra.mxu0 %vm114_vm0, %v3234_v26  ;;  %2885 = vmatmul.mubr.msk.f32.vlgmr.msra.gmra.mxu1 %vm114_vm0, %v3234_v26 }
  0x29   :  { %2887 = vmatprep.subr.mxu0 %v3072_v2  ;;  %2889 = vmatprep.mubr.msk.f32.mxu0 %vm3073_vm1, %v3072_v2 }
  0x2a   :  { %2892 = vmatprep.subr.mxu1 %v3072_v2  ;;  %2894 = vmatprep.mubr.msk.f32.mxu1 %vm3073_vm1, %v3072_v2 }
  0xc9   :  { %v184_v36 = vpop.f32.mrf.mxu0 }
  0xca   :  { %v185_v38 = vadd.f32 %v2660_v35, %v184_v36 }
  0xcb   :  { %v254_v39 = vpop.f32.mrf.mxu1  ;;  %v2809_v40 = vpop.f32.mrf.mxu0 }
  0xcc   :  { %v255_v41 = vadd.f32 %v2661_v37, %v254_v39  ;;  %698 = vrot.lane.b32.xlu0 %v185_v38, %s3074_s19  ;;  %v681_v5 = vmul.f32 0.35355338, %v185_v38 }
  0xcd   :  { %v2820_v42 = vpop.f32.mrf.mxu1 }
  0xce   :  { %v682_v7 = vmul.f32 0.35355338, %v255_v41 }
  0xd0   :  { %777 = vrot.lane.b32.xlu0 %v255_v41, %s3074_s19 }
  0xd3   :  { %v324_v44 = vpop.f32.mrf.mxu0 }
  0xd4   :  { %v325_v46 = vadd.f32 %v2662_v43, %v324_v44 }
  0xd5   :  { %v394_v47 = vpop.f32.mrf.mxu1  ;;  %v2831_v48 = vpop.f32.mrf.mxu0 }
  0xd6   :  { %v395_v49 = vadd.f32 %v2663_v45, %v394_v47  ;;  %855 = vrot.lane.b32.xlu1 %v325_v46, %s3074_s19  ;;  %v683_v10 = vmul.f32 0.35355338, %v325_v46  ;;  %v693_v45 = vld [vmem:[%s3535_s1 + $0x20] sm:$0xff] }
  0xd7   :  { %v2842_v50 = vpop.f32.mrf.mxu1 }
  0xd8   :  { %v684_v12 = vmul.f32 0.35355338, %v395_v49 }
  0xda   :  { %933 = vrot.lane.b32.xlu1 %v395_v49, %s3074_s19 }
  0xde   :  { %v467_v53 = vpop.f32.mrf.mxu0  ;;  %v537_v54 = vpop.f32.mrf.mxu1 }
  0xdf   :  { %v468_v55 = vadd.f32 %v2664_v51, %v467_v53  ;;  %v538_v56 = vadd.f32 %v2665_v52, %v537_v54 }
  0xe0   :  { %v2853_v57 = vpop.f32.mrf.mxu0  ;;  %v2864_v58 = vpop.f32.mrf.mxu1 }
  0xe1   :  { %1089 = vrot.lane.b32.xlu1 %v538_v56, %s3074_s19  ;;  %1011 = vrot.lane.b32.xlu0 %v468_v55, %s3074_s19  ;;  %v685_v15 = vmul.f32 0.35355338, %v468_v55  ;;  %v686_v16 = vmul.f32 0.35355338, %v538_v56 }
  0xe8   :  { %v607_v61 = vpop.f32.mrf.mxu0  ;;  %v677_v62 = vpop.f32.mrf.mxu1 }
  0xe9   :  { %v3320_v63 = vadd.f32 %v2666_v59, %v607_v61  ;;  %v3322_v0 = vadd.f32 %v2667_v60, %v677_v62  ;;  %v695_v59 = vld [vmem:[%s3535_s1 + $0x30] sm:$0xff]  ;;  %v696_v60 = vld [vmem:[%s3535_s1 + $0x38] sm:$0xff] }
  0xea   :  { %v2875_v1 = vpop.f32.mrf.mxu0  ;;  %v2886_v3 = vpop.f32.mrf.mxu1 }
  0xeb   :  { %1245 = vrot.lane.b32.xlu1 %v3322_v0, %s3074_s19  ;;  %1167 = vrot.lane.b32.xlu0 %v3320_v63, %s3074_s19  ;;  %v687_v19 = vmul.f32 0.35355338, %v3320_v63  ;;  %v688_v20 = vmul.f32 0.35355338, %v3322_v0 }
  0xef   :  { %1378 = vrot.lane.b32.xlu1 %v185_v38, %s3075_s7  ;;  %1454 = vrot.lane.b32.xlu0 %v255_v41, %s3075_s7  ;;  %v692_v38 = vld [vmem:[%s3535_s1 + $0x18] sm:$0xff] }
  0xf3   :  { %1530 = vrot.lane.b32.xlu1 %v325_v46, %s3075_s7  ;;  %1682 = vrot.lane.b32.xlu0 %v468_v55, %s3075_s7  ;;  %v694_v46 = vld [vmem:[%s3535_s1 + $0x28] sm:$0xff] }
  0xf7   :  { %1606 = vrot.lane.b32.xlu1 %v395_v49, %s3075_s7 }
  0xfb   :  { %1758 = vrot.lane.b32.xlu1 %v538_v56, %s3075_s7 }
 0x13e   :  { %v699_v4 = vpop.permute.xlu0 %698 }
 0x13f   :  { %2888 = vmatpush3.xpose.msk.msra.mxu0 %vm700_vm2, %v699_v4 }
 0x140   :  { %2897 = vmatprep.subr.mxu0 %v3072_v2 }
 0x142   :  { %v778_v6 = vpop.permute.xlu0 %777  ;;  %2890 = vmatmul.mubr.msk.f32.vlgmr.msra.gmra.mxu0 %vm700_vm2, %v681_v5 }
 0x143   :  { %2893 = vmatpush3.xpose.msk.msra.mxu1 %vm700_vm2, %v778_v6  ;;  %2899 = vmatprep.mubr.msk.f32.mxu0 %vm3073_vm1, %v3072_v2 }
 0x144   :  { %2902 = vmatprep.subr.mxu1 %v3072_v2 }
 0x146   :  { %2895 = vmatmul.mubr.msk.f32.vlgmr.msra.gmra.mxu1 %vm700_vm2, %v682_v7 }
 0x147   :  { %2904 = vmatprep.mubr.msk.f32.mxu1 %vm3073_vm1, %v3072_v2 }
 0x148   :  { %v856_v8 = vpop.permute.xlu1 %855 }
 0x149   :  { %2898 = vmatpush3.xpose.msk.msra.mxu0 %vm700_vm2, %v856_v8 }
 0x14a   :  { %2907 = vmatprep.subr.mxu0 %v3072_v2 }
 0x14c   :  { %v934_v11 = vpop.permute.xlu1 %933  ;;  %2900 = vmatmul.mubr.msk.f32.vlgmr.msra.gmra.mxu0 %vm700_vm2, %v683_v10 }
 0x14d   :  { %2903 = vmatpush3.xpose.msk.msra.mxu1 %vm700_vm2, %v934_v11  ;;  %2909 = vmatprep.mubr.msk.f32.mxu0 %vm3073_vm1, %v3072_v2 }
 0x14e   :  { %2912 = vmatprep.subr.mxu1 %v3072_v2 }
 0x150   :  { %2905 = vmatmul.mubr.msk.f32.vlgmr.msra.gmra.mxu1 %vm700_vm2, %v684_v12 }
 0x151   :  { %2914 = vmatprep.mubr.msk.f32.mxu1 %vm3073_vm1, %v3072_v2 }
 0x153   :  { %v1090_v13 = vpop.permute.xlu1 %1089  ;;  %v1012_v14 = vpop.permute.xlu0 %1011 }
 0x154   :  { %2908 = vmatpush3.xpose.msk.msra.mxu0 %vm700_vm2, %v1012_v14  ;;  %2913 = vmatpush3.xpose.msk.msra.mxu1 %vm700_vm2, %v1090_v13 }
 0x155   :  { %2922 = vmatprep.subr.mxu1 %v3072_v2  ;;  %2917 = vmatprep.subr.mxu0 %v3072_v2 }
 0x157   :  { %2910 = vmatmul.mubr.msk.f32.vlgmr.msra.gmra.mxu0 %vm700_vm2, %v685_v15  ;;  %2915 = vmatmul.mubr.msk.f32.vlgmr.msra.gmra.mxu1 %vm700_vm2, %v686_v16 }
 0x158   :  { %2919 = vmatprep.mubr.msk.f32.mxu0 %vm3073_vm1, %v3072_v2  ;;  %2924 = vmatprep.mubr.msk.f32.mxu1 %vm3073_vm1, %v3072_v2 }
 0x15d   :  { %v1246_v17 = vpop.permute.xlu1 %1245  ;;  %v1168_v18 = vpop.permute.xlu0 %1167 }
 0x15e   :  { %2918 = vmatpush3.xpose.msk.msra.mxu0 %vm700_vm2, %v1168_v18  ;;  %2923 = vmatpush3.xpose.msk.msra.mxu1 %vm700_vm2, %v1246_v17 }
 0x15f   :  { %2932 = vmatprep.subr.mxu1 %v3072_v2  ;;  %2927 = vmatprep.subr.mxu0 %v3072_v2 }
 0x161   :  { %2925 = vmatmul.mubr.msk.f32.vlgmr.msra.gmra.mxu1 %vm700_vm2, %v688_v20  ;;  %v1379_v21 = vpop.permute.xlu1 %1378  ;;  %v1455_v22 = vpop.permute.xlu0 %1454  ;;  %2920 = vmatmul.mubr.msk.f32.vlgmr.msra.gmra.mxu0 %vm700_vm2, %v687_v19 }
 0x162   :  { %2928 = vmatpush3.msra.mxu0 %v1379_v21  ;;  %2933 = vmatpush3.msra.mxu1 %v1455_v22 }
 0x163   :  { %2929 = vmatprep.mubr.msk.f32.mxu0 %vm3073_vm1, %v3072_v2  ;;  %2937 = vmatprep.subr.mxu0 %v3072_v2 }
 0x164   :  { %2934 = vmatprep.mubr.msk.f32.mxu1 %vm3073_vm1, %v3072_v2  ;;  %2942 = vmatprep.subr.mxu1 %v3072_v2 }
 0x165   :  { %v1531_v20 = vpop.permute.xlu1 %1530  ;;  %v1683_v22 = vpop.permute.xlu0 %1682 }
 0x169   :  { %v1607_v21 = vpop.permute.xlu1 %1606 }
 0x202   :  { %v772_v24 = vpop.f32.mrf.mxu0 }
 0x203   :  { %v773_v25 = vadd.f32 %v772_v24, %v689_v23  ;;  %v1759_v23 = vpop.permute.xlu1 %1758 }
 0x204   :  { %v2891_v27 = vpop.f32.mrf.mxu0 }
 0x205   :  { %v1322_v29 = vmul.f32 1.442695, %v773_v25 }
 0x206   :  { %v850_v30 = vpop.f32.mrf.mxu1 }
 0x207   :  { %3014 = vpow2.f32 %v1322_v29  ;;  %v851_v31 = vadd.f32 %v850_v30, %v690_v28 }
 0x208   :  { %v2896_v32 = vpop.f32.mrf.mxu1 }
 0x209   :  { %v1324_v33 = vmul.f32 1.442695, %v851_v31 }
 0x20b   :  { %3016 = vpow2.f32 %v1324_v33 }
 0x20c   :  { %v928_v35 = vpop.f32.mrf.mxu0 }
 0x20d   :  { %v929_v36 = vadd.f32 %v928_v35, %v691_v34 }
 0x20e   :  { %v2901_v37 = vpop.f32.mrf.mxu0 }
 0x20f   :  { %v1326_v39 = vmul.f32 1.442695, %v929_v36 }
 0x210   :  { %v1006_v40 = vpop.f32.mrf.mxu1 }
 0x211   :  { %3018 = vpow2.f32 %v1326_v39  ;;  %v1007_v41 = vadd.f32 %v1006_v40, %v692_v38 }
 0x212   :  { %v2906_v42 = vpop.f32.mrf.mxu1 }
 0x213   :  { %v1328_v43 = vmul.f32 1.442695, %v1007_v41 }
 0x214   :  { %v3390_v44 = vpop.eup %3014 }
 0x215   :  { %3020 = vpow2.f32 %v1328_v43  ;;  %v1338_v47 = vsel %vm700_vm2, %v3390_v44, 0.0 }
 0x216   :  { %1339 = vadd.xlane.f32.xlu0 %v1338_v47 }
 0x217   :  { %v1084_v48 = vpop.f32.mrf.mxu0  ;;  %v1162_v49 = vpop.f32.mrf.mxu1 }
 0x218   :  { %v3017_v50 = vpop.eup %3016  ;;  %v1085_v51 = vadd.f32 %v1084_v48, %v693_v45  ;;  %v1163_v52 = vadd.f32 %v1162_v49, %v694_v46  ;;  %v1986_v49 = vld [vmem:[%s3538_s4] sm:$0xff] }
 0x219   :  { %v2911_v53 = vpop.f32.mrf.mxu0  ;;  %v2916_v54 = vpop.f32.mrf.mxu1  ;;  %v1341_v55 = vsel %vm700_vm2, %v3017_v50, 0.0 }
 0x21a   :  { %v1330_v56 = vmul.f32 1.442695, %v1085_v51  ;;  %v1332_v57 = vmul.f32 1.442695, %v1163_v52  ;;  %1342 = vadd.xlane.f32.xlu1 %v1341_v55  ;;  %v1988_v51 = vld [vmem:[%s3538_s4 + $0x10] sm:$0xff]  ;;  %v1989_v54 = vld [vmem:[%s3538_s4 + $0x18] sm:$0xff] }
 0x21c   :  { %3022 = vpow2.f32 %v1330_v56 }
 0x21d   :  { %3024 = vpow2.f32 %v1332_v57  ;;  %v1990_v57 = vld [vmem:[%s3538_s4 + $0x20] sm:$0xff] }
 0x21e   :  { %v3019_v58 = vpop.eup %3018 }
 0x21f   :  { %v1344_v61 = vsel %vm700_vm2, %v3019_v58, 0.0 }
 0x220   :  { %1345 = vadd.xlane.f32.xlu0 %v1344_v61 }
 0x221   :  { %v1240_v62 = vpop.f32.mrf.mxu0  ;;  %v1318_v1 = vpop.f32.mrf.mxu1 }
 0x222   :  { %v3021_v3 = vpop.eup %3020  ;;  %v1241_v4 = vadd.f32 %v1240_v62, %v695_v59  ;;  %v1319_v5 = vadd.f32 %v1318_v1, %v696_v60  ;;  %v1991_v60 = vld [vmem:[%s3538_s4 + $0x28] sm:$0xff]  ;;  %v1992_v1 = vld [vmem:[%s3538_s4 + $0x30] sm:$0xff] }
 0x223   :  { %v2921_v6 = vpop.f32.mrf.mxu0  ;;  %v2926_v7 = vpop.f32.mrf.mxu1  ;;  %v1347_v8 = vsel %vm700_vm2, %v3021_v3, 0.0 }
 0x224   :  { %v1334_v10 = vmul.f32 1.442695, %v1241_v4  ;;  %v1336_v11 = vmul.f32 1.442695, %v1319_v5  ;;  %1348 = vadd.xlane.f32.xlu0 %v1347_v8  ;;  %v1993_v4 = vld [vmem:[%s3538_s4 + $0x38] sm:$0xff] }
 0x226   :  { %3026 = vpow2.f32 %v1334_v10 }
 0x227   :  { %3028 = vpow2.f32 %v1336_v11 }
 0x229   :  { %v3023_v12 = vpop.eup %3022 }
 0x22a   :  { %v3025_v13 = vpop.eup %3024  ;;  %v1350_v14 = vsel %vm700_vm2, %v3023_v12, 0.0 }
 0x22b   :  { %v1353_v15 = vsel %vm700_vm2, %v3025_v13, 0.0  ;;  %1351 = vadd.xlane.f32.xlu1 %v1350_v14 }
 0x22c   :  { %1354 = vadd.xlane.f32.xlu0 %v1353_v15 }
 0x233   :  { %v3411_v16 = vpop.eup %3026 }
 0x234   :  { %v3413_v17 = vpop.eup %3028  ;;  %v1356_v18 = vsel %vm700_vm2, %v3411_v16, 0.0 }
 0x235   :  { %v1359_v19 = vsel %vm700_vm2, %v3413_v17, 0.0  ;;  %1357 = vadd.xlane.f32.xlu1 %v1356_v18 }
 0x236   :  { %1360 = vadd.xlane.f32.xlu0 %v1359_v19 }
 0x246   :  { %1910 = vrot.lane.b32.xlu1 %v3322_v0, %s3075_s7 }
 0x24c   :  { %1834 = vrot.lane.b32.xlu0 %v3320_v63, %s3075_s7 }
 0x29f   :  { %v1340_v24 = vpop.xlane.xlu0 %1339 }
 0x2a0   :  { %3030 = vrcp.f32 %v1340_v24 }
 0x2a3   :  { %v1343_v25 = vpop.xlane.xlu1 %1342 }
 0x2a4   :  { %3032 = vrcp.f32 %v1343_v25  ;;  %v2708_v25 = vld [vmem:[%s3539_s5] ss:$0 sm:$0xff] }
 0x2a9   :  { %v1346_v27 = vpop.xlane.xlu0 %1345 }
 0x2aa   :  { %3034 = vrcp.f32 %v1346_v27 }
 0x2ad   :  { %v3031_v28 = vpop.eup %3030  ;;  %v1349_v29 = vpop.xlane.xlu0 %1348 }
 0x2ae   :  { %3036 = vrcp.f32 %v1349_v29  ;;  %v1370_v30 = vmul.f32 %v3031_v28, %v3390_v44 }
 0x2b0   :  { %2930 = vmatmul.mubr.msk.f32.vlgmr.msra.gmra.mxu0 %vm700_vm2, %v1370_v30 }
 0x2b1   :  { %v3033_v0 = vpop.eup %3032  ;;  %2938 = vmatpush3.msra.mxu0 %v1531_v20  ;;  %2939 = vmatprep.mubr.msk.f32.mxu0 %vm3073_vm1, %v3072_v2 }
 0x2b2   :  { %v1371_v63 = vmul.f32 %v3033_v0, %v3017_v50  ;;  %2947 = vmatprep.subr.mxu0 %v3072_v2  ;;  %v1987_v50 = vld [vmem:[%s3538_s4 + $0x8] sm:$0xff] }
 0x2b4   :  { %v1352_v31 = vpop.xlane.xlu1 %1351  ;;  %2935 = vmatmul.mubr.msk.f32.vlgmr.msra.gmra.mxu1 %vm700_vm2, %v1371_v63 }
 0x2b5   :  { %v1355_v32 = vpop.xlane.xlu0 %1354  ;;  %3038 = vrcp.f32 %v1352_v31  ;;  %2943 = vmatpush3.msra.mxu1 %v1607_v21  ;;  %2944 = vmatprep.mubr.msk.f32.mxu1 %vm3073_vm1, %v3072_v2 }
 0x2b6   :  { %3040 = vrcp.f32 %v1355_v32  ;;  %2952 = vmatprep.subr.mxu1 %v3072_v2 }
 0x2b7   :  { %v3035_v33 = vpop.eup %3034 }
 0x2b8   :  { %v1372_v34 = vmul.f32 %v3035_v33, %v3019_v58 }
 0x2ba   :  { %2940 = vmatmul.mubr.msk.f32.vlgmr.msra.gmra.mxu0 %vm700_vm2, %v1372_v34 }
 0x2bb   :  { %v3037_v35 = vpop.eup %3036  ;;  %2948 = vmatpush3.msra.mxu0 %v1683_v22  ;;  %2949 = vmatprep.mubr.msk.f32.mxu0 %vm3073_vm1, %v3072_v2 }
 0x2bc   :  { %v1373_v36 = vmul.f32 %v3037_v35, %v3021_v3  ;;  %2957 = vmatprep.subr.mxu0 %v3072_v2 }
 0x2be   :  { %v1358_v37 = vpop.xlane.xlu1 %1357  ;;  %2945 = vmatmul.mubr.msk.f32.vlgmr.msra.gmra.mxu1 %vm700_vm2, %v1373_v36 }
 0x2bf   :  { %v1361_v38 = vpop.xlane.xlu0 %1360  ;;  %3042 = vrcp.f32 %v1358_v37  ;;  %2953 = vmatpush3.msra.mxu1 %v1759_v23  ;;  %2954 = vmatprep.mubr.msk.f32.mxu1 %vm3073_vm1, %v3072_v2 }
 0x2c0   :  { %3044 = vrcp.f32 %v1361_v38  ;;  %2962 = vmatprep.subr.mxu1 %v3072_v2 }
 0x2c2   :  { %v3039_v39 = vpop.eup %3038  ;;  %v1911_v44 = vpop.permute.xlu1 %1910 }
 0x2c3   :  { %v3041_v40 = vpop.eup %3040  ;;  %v1374_v41 = vmul.f32 %v3039_v39, %v3023_v12  ;;  %v1835_v43 = vpop.permute.xlu0 %1834 }
 0x2c4   :  { %v1375_v42 = vmul.f32 %v3041_v40, %v3025_v13 }
 0x2c5   :  { %2950 = vmatmul.mubr.msk.f32.vlgmr.msra.gmra.mxu0 %vm700_vm2, %v1374_v41 }
 0x2c6   :  { %2955 = vmatmul.mubr.msk.f32.vlgmr.msra.gmra.mxu1 %vm700_vm2, %v1375_v42  ;;  %2958 = vmatpush3.msra.mxu0 %v1835_v43 }
 0x2c7   :  { %2963 = vmatpush3.msra.mxu1 %v1911_v44  ;;  %2959 = vmatprep.mubr.msk.f32.mxu0 %vm3073_vm1, %v3072_v2 }
 0x2c8   :  { %2964 = vmatprep.mubr.msk.f32.mxu1 %vm3073_vm1, %v3072_v2  ;;  %2967 = vmatprep.subr.mxu0 %v3072_v2 }
 0x2c9   :  { %2972 = vmatprep.subr.mxu1 %v3072_v2 }
 0x2cc   :  { %v3043_v45 = vpop.eup %3042 }
 0x2cd   :  { %v3045_v46 = vpop.eup %3044  ;;  %v1376_v47 = vmul.f32 %v3043_v45, %v3411_v16 }
 0x2ce   :  { %v1377_v48 = vmul.f32 %v3045_v46, %v3413_v17 }
 0x2cf   :  { %2960 = vmatmul.mubr.msk.f32.vlgmr.msra.gmra.mxu0 %vm700_vm2, %v1376_v47 }
 0x2d0   :  { %2965 = vmatmul.mubr.msk.f32.vlgmr.msra.gmra.mxu1 %vm700_vm2, %v1377_v48  ;;  %2969 = vmatprep.mubr.msk.f32.mxu0 %vm3073_vm1, %v3072_v2 }
 0x2d1   :  { %2974 = vmatprep.mubr.msk.f32.mxu1 %vm3073_vm1, %v3072_v2  ;;  %2968 = vmatpush3.msra.mxu0 %v1986_v49 }
 0x2d2   :  { %2977 = vmatprep.subr.mxu0 %v3072_v2  ;;  %2973 = vmatpush3.msra.mxu1 %v1987_v50 }
 0x2d3   :  { %2982 = vmatprep.subr.mxu1 %v3072_v2 }
 0x370   :  { %v1450_v52 = vpop.f32.mrf.mxu0 }
 0x371   :  { %2970 = vmatmul.mubr.msk.f32.vlgmr.msra.gmra.mxu0 %vm700_vm2, %v1450_v52 }
 0x372   :  { %v2931_v53 = vpop.f32.mrf.mxu0  ;;  %2978 = vmatpush3.msra.mxu0 %v1988_v51  ;;  %2979 = vmatprep.mubr.msk.f32.mxu0 %vm3073_vm1, %v3072_v2 }
 0x373   :  { %2987 = vmatprep.subr.mxu0 %v3072_v2 }
 0x374   :  { %v1526_v55 = vpop.f32.mrf.mxu1 }
 0x375   :  { %2975 = vmatmul.mubr.msk.f32.vlgmr.msra.gmra.mxu1 %vm700_vm2, %v1526_v55 }
 0x376   :  { %v2936_v56 = vpop.f32.mrf.mxu1  ;;  %2983 = vmatpush3.msra.mxu1 %v1989_v54  ;;  %2984 = vmatprep.mubr.msk.f32.mxu1 %vm3073_vm1, %v3072_v2 }
 0x377   :  { %2992 = vmatprep.subr.mxu1 %v3072_v2 }
 0x37a   :  { %v1602_v58 = vpop.f32.mrf.mxu0 }
 0x37b   :  { %2980 = vmatmul.mubr.msk.f32.vlgmr.msra.gmra.mxu0 %vm700_vm2, %v1602_v58 }
 0x37c   :  { %v2941_v59 = vpop.f32.mrf.mxu0  ;;  %2988 = vmatpush3.msra.mxu0 %v1990_v57  ;;  %2989 = vmatprep.mubr.msk.f32.mxu0 %vm3073_vm1, %v3072_v2 }
 0x37d   :  { %2997 = vmatprep.subr.mxu0 %v3072_v2 }
 0x37e   :  { %v1678_v61 = vpop.f32.mrf.mxu1 }
 0x37f   :  { %2985 = vmatmul.mubr.msk.f32.vlgmr.msra.gmra.mxu1 %vm700_vm2, %v1678_v61 }
 0x380   :  { %v2946_v62 = vpop.f32.mrf.mxu1  ;;  %2993 = vmatpush3.msra.mxu1 %v1991_v60  ;;  %2994 = vmatprep.mubr.msk.f32.mxu1 %vm3073_vm1, %v3072_v2  ;;  %v2709_v60 = vld [vmem:[%s3539_s5 + $0x1] ss:$0 sm:$0xff] }
 0x381   :  { %3002 = vmatprep.subr.mxu1 %v3072_v2 }
 0x385   :  { %v1754_v3 = vpop.f32.mrf.mxu0 }
 0x386   :  { %v1830_v5 = vpop.f32.mrf.mxu1  ;;  %2990 = vmatmul.mubr.msk.f32.vlgmr.msra.gmra.mxu0 %vm700_vm2, %v1754_v3  ;;  %v2710_v3 = vld [vmem:[%s3539_s5 + $0x2] ss:$0 sm:$0xff] }
 0x387   :  { %2995 = vmatmul.mubr.msk.f32.vlgmr.msra.gmra.mxu1 %vm700_vm2, %v1830_v5  ;;  %v2951_v6 = vpop.f32.mrf.mxu0  ;;  %2998 = vmatpush3.msra.mxu0 %v1992_v1 }
 0x388   :  { %v2956_v7 = vpop.f32.mrf.mxu1  ;;  %2999 = vmatprep.mubr.msk.f32.mxu0 %vm3073_vm1, %v3072_v2  ;;  %3003 = vmatpush3.msra.mxu1 %v1993_v4 }
 0x389   :  { %3004 = vmatprep.mubr.msk.f32.mxu1 %vm3073_vm1, %v3072_v2 }
 0x38f   :  { %v1906_v8 = vpop.f32.mrf.mxu0 }
 0x390   :  { %v1982_v10 = vpop.f32.mrf.mxu1  ;;  %3000 = vmatmul.mubr.msk.f32.vlgmr.msra.gmra.mxu0 %vm700_vm2, %v1906_v8 }
 0x391   :  { %3005 = vmatmul.mubr.msk.f32.vlgmr.msra.gmra.mxu1 %vm700_vm2, %v1982_v10  ;;  %v2961_v11 = vpop.f32.mrf.mxu0 }
 0x392   :  { %v2966_v12 = vpop.f32.mrf.mxu1 }
 0x431   :  { %v2063_v13 = vpop.f32.mrf.mxu0 }
 0x432   :  { %v2578_v19 = vsel %vm114_vm0, %v2063_v13, 0.0 }
 0x433   :  { %v2971_v14 = vpop.f32.mrf.mxu0 }
 0x435   :  { %v2136_v15 = vpop.f32.mrf.mxu1 }
 0x436   :  { %v2579_v17 = vsel %vm114_vm0, %v2136_v15, 0.0 }
 0x437   :  { %v2976_v16 = vpop.f32.mrf.mxu1  ;;  %v2580_v2 = vadd.f32 %v2579_v17, %v2578_v19 }
 0x43b   :  { %v2209_v18 = vpop.f32.mrf.mxu0 }
 0x43c   :  { %v2581_v20 = vsel %vm114_vm0, %v2209_v18, 0.0 }
 0x43d   :  { %v2981_v21 = vpop.f32.mrf.mxu0  ;;  %v2582_v22 = vadd.f32 %v2581_v20, %v2580_v2 }
 0x43f   :  { %v2282_v23 = vpop.f32.mrf.mxu1 }
 0x440   :  { %v2583_v24 = vsel %vm114_vm0, %v2282_v23, 0.0 }
 0x441   :  { %v2584_v27 = vadd.f32 %v2583_v24, %v2582_v22  ;;  %v2986_v28 = vpop.f32.mrf.mxu1 }
 0x443   :  { %v2599_v29 = vadd.f32 %v2708_v25, %v2584_v27 }
 0x445   :  { %v2601_v30 = vadd.f32 %v2599_v29, %v3147_v9 }
 0x446   :  { %v2355_v0 = vpop.f32.mrf.mxu0 }
 0x447   :  { %v2428_v63 = vpop.f32.mrf.mxu1  ;;  %v2603_v31 = vsel %vm114_vm0, %v2601_v30, 0.0  ;;  %v2585_v34 = vsel %vm114_vm0, %v2355_v0, 0.0 }
 0x448   :  { %v2991_v32 = vpop.f32.mrf.mxu0  ;;  %2604 = vadd.xlane.f32.xlu0 %v2603_v31  ;;  %v2586_v35 = vsel %vm114_vm0, %v2428_v63, 0.0 }
 0x449   :  { %v2996_v33 = vpop.f32.mrf.mxu1  ;;  %v2587_v36 = vadd.f32 %v2586_v35, %v2585_v34 }
 0x450   :  { %v2501_v37 = vpop.f32.mrf.mxu0 }
 0x451   :  { %v2588_v38 = vsel %vm114_vm0, %v2501_v37, 0.0  ;;  %v2574_v39 = vpop.f32.mrf.mxu1 }
 0x452   :  { %v2589_v40 = vadd.f32 %v2588_v38, %v2587_v36  ;;  %v3001_v41 = vpop.f32.mrf.mxu0  ;;  %v2590_v9 = vsel %vm114_vm0, %v2574_v39, 0.0 }
 0x453   :  { %v3006_v42 = vpop.f32.mrf.mxu1 }
 0x454   :  { %v2591_v43 = vadd.f32 %v2590_v9, %v2589_v40 }
 0x456   :  { %v2600_v44 = vadd.f32 %v2708_v25, %v2591_v43 }
 0x458   :  { %v2602_v45 = vadd.f32 %v2600_v44, %v3234_v26 }
 0x45a   :  { %v2606_v46 = vsel %vm114_vm0, %v2602_v45, 0.0 }
 0x45b   :  { %2607 = vadd.xlane.f32.xlu1 %v2606_v46 }
 0x4d1   :  { %v2605_v47 = vpop.xlane.xlu0 %2604 }
 0x4d2   :  { %v2610_v48 = vmul.f32 0.03125, %v2605_v47 }
 0x4d4   :  { %v2612_v49 = vsub.f32 %v2601_v30, %v2610_v48 }
 0x4d6   :  { %v2614_v50 = vmul.f32 %v2612_v49, %v2612_v49 }
 0x4d8   :  { %v2616_v51 = vsel %vm114_vm0, %v2614_v50, 0.0 }
 0x4d9   :  { %2617 = vadd.xlane.f32.xlu0 %v2616_v51 }
 0x4e4   :  { %v2608_v52 = vpop.xlane.xlu1 %2607 }
 0x4e5   :  { %v2611_v53 = vmul.f32 0.03125, %v2608_v52 }
 0x4e7   :  { %v2613_v54 = vsub.f32 %v2602_v45, %v2611_v53 }
 0x4e9   :  { %v2615_v55 = vmul.f32 %v2613_v54, %v2613_v54 }
 0x4eb   :  { %v2619_v56 = vsel %vm114_vm0, %v2615_v55, 0.0 }
 0x4ec   :  { %2620 = vadd.xlane.f32.xlu0 %v2619_v56 }
 0x562   :  { %v2618_v57 = vpop.xlane.xlu0 %2617 }
 0x563   :  { %v2622_v58 = vmul.f32 0.03125, %v2618_v57 }
 0x565   :  { %v2624_v26 = vadd.f32 1e-12, %v2622_v58 }
 0x567   :  { %3046 = vrsqrt.f32 %v2624_v26 }
 0x574   :  { %v3047_v59 = vpop.eup %3046 }
 0x575   :  { %v2621_v61 = vpop.xlane.xlu0 %2620  ;;  %v2628_v62 = vmul.f32 %v3047_v59, %v2612_v49 }
 0x576   :  { %v2623_v1 = vmul.f32 0.03125, %v2621_v61 }
 0x577   :  { %v2634_v4 = vmul.f32 %v2709_v60, %v2628_v62 }
 0x578   :  { %v2625_v5 = vadd.f32 1e-12, %v2623_v1 }
 0x579   :  { %v2640_v6 = vadd.f32 %v2710_v3, %v2634_v4 }
 0x57a   :  { %3048 = vrsqrt.f32 %v2625_v5 }
 0x57b   :  { %2642 = vst.msk [vmem:[#allocation2] sm:$0xff] %vm114_vm0, %v2640_v6 }
 0x587   :  { %v3049_v7 = vpop.eup %3048 }
 0x588   :  { %v2629_v8 = vmul.f32 %v3049_v7, %v2613_v54 }
 0x58a   :  { %v2635_v10 = vmul.f32 %v2709_v60, %v2629_v8 }
 0x58c   :  { %v2641_v11 = vadd.f32 %v2710_v3, %v2635_v10 }
 0x58e   :  { %2643 = vst.msk [vmem:[#allocation2 + $0x8] sm:$0xff] %vm114_vm0, %v2641_v11 }
 0x58f   :  { %3061 = shalt.err (!%p3058_p4)
}
 0x590   :  { %s3077_s5 = smov 128   ;;  %s3078_s18 = smov 8  }
 0x591   :  { %2655 = dma.vmem_to_hbm [thread:$0]  %s2650_s16, 256, %s3540_s6, [#allocation3], %s3077_s5, %s3077_s5, %s3078_s18  }
 0x592   :  { %3070 = dma.done.wait [#allocation3], 256  }
 0x593   :  { %3071 = vsyncadd [#allocation3], 4294967040 }
 0x594   :  { %2659 = vsyncpa [#allocation3], 1 }

</bundles_post_ra>
